<compile_context>
chip_gen: v7x
topology: tpu7x:2x2x1
jax: 0.10.0
libtpu: 0.0.40
codegen_flags: <defaults>
</compile_context>

<pallas_src>
import re

import jax
import jax.numpy as jnp
from jax.experimental import pallas as pl
from jax.experimental.pallas import tpu as pltpu

_LANE = 128


def _tpu_generation() -> int:
    """Best-effort TPU generation (5, 6, 7, ...) from device_kind; 0 if unknown."""
    try:
        dev = jax.devices()[0]
        if dev.platform != "tpu":
            return 0
        m = re.search(r"(\d+)", dev.device_kind)
        return int(m.group(1)) if m else 0
    except Exception:  # defensive: never let sizing heuristics break the op
        return 0


def _make_swish_kernel(beta: float, compute_dtype):
    beta = float(beta)

    def _swish_kernel(x_ref, o_ref):
        # x_ref / o_ref: (block_rows, lane_width) VMEM tiles.
        x = x_ref[...].astype(compute_dtype)
        # sigmoid(z) == 0.5 * (tanh(z / 2) + 1): a single EUP transcendental
        # per element instead of exp + divide.
        sig = 0.5 * (jnp.tanh((0.5 * beta) * x) + 1.0)
        o_ref[...] = (x * sig).astype(o_ref.dtype)

    return _swish_kernel


def swish(x: jax.Array, beta: float = 1.0) -> jax.Array:
    """Elementwise Swish matching the PyTorch module: x * sigmoid(beta * x)."""
    orig_shape = x.shape
    dtype = x.dtype
    n = x.size
    if n == 0:
        return x

    itemsize = jnp.dtype(dtype).itemsize
    # Packed-sublane multiple: 8 rows for 32-bit, 16 for 16-bit, 32 for 8-bit.
    sub = {4: 8, 2: 16, 1: 32}.get(itemsize, 8)
    gen = _tpu_generation()

    # bf16 VPU/EUP exist on v6e/v7x -> compute natively; otherwise f32.
    if dtype == jnp.bfloat16 and gen >= 6:
        compute_dtype = jnp.bfloat16
    else:
        compute_dtype = jnp.float32

    # ---- choose a lane-dense 2D layout --------------------------------------
    pad = 0
    if x.ndim >= 2 and orig_shape[-1] % _LANE == 0:
        # Trailing dim already lane-aligned: collapsing only the leading dims
        # is a guaranteed zero-cost bitcast (no relayout pass before the kernel).
        lane_width = orig_shape[-1]
        x2d = x.reshape(-1, lane_width)
    else:
        lane_width = None
        for c in (8192, 4096, 2048, 1024, 512, 256, 128):
            if n % c == 0:
                lane_width = c
                break
        if lane_width is None:
            # Ragged fallback (rare; never hit by this model's shapes): pad to
            # the next multiple of 128.  swish(0) == 0, so the pad region is
            # harmless and sliced off below.  Costs one extra HBM pass.
            lane_width = _LANE
            pad = (-n) % _LANE
            x2d = jnp.pad(x.reshape(-1), (0, pad)).reshape(-1, _LANE)
        else:
            x2d = x.reshape(-1, lane_width)

    rows = x2d.shape[0]
    bytes_per_row = lane_width * itemsize

    # ---- generation-aware row-block sizing -----------------------------------
    target_tile_bytes = {7: 6 << 20, 6: 6 << 20, 5: 3 << 20}.get(gen, 2 << 20)

    if rows <= sub:
        block_rows = rows  # single tiny tile; full extent is always legal
    else:
        br = min(rows, max(1, target_tile_bytes // bytes_per_row))
        br = max(sub, (br // sub) * sub)
        if pl.cdiv(rows, br) < 2:
            # Ensure >= 2 grid steps so the DMA pipeline has work to overlap
            # and v7x's two TensorCores both get a share of the row blocks.
            br = max(sub, ((pl.cdiv(rows, 2) + sub - 1) // sub) * sub)
            if br >= rows:
                br = rows
        block_rows = br

    grid = (pl.cdiv(rows, block_rows),)

    out2d = pl.pallas_call(
        _make_swish_kernel(beta, compute_dtype),
        out_shape=jax.ShapeDtypeStruct((rows, lane_width), dtype),
        grid=grid,
        in_specs=[pl.BlockSpec((block_rows, lane_width), lambda i: (i, 0))],
        out_specs=pl.BlockSpec((block_rows, lane_width), lambda i: (i, 0)),
        compiler_params=pltpu.CompilerParams(
            dimension_semantics=("parallel",),
        ),
    )(x2d)

    if pad:
        return out2d.reshape(-1)[:n].reshape(orig_shape)
    return out2d.reshape(orig_shape)


def swish_ref(x, beta=1.0):
    xf = x.astype(jnp.float32)
    return (xf * jax.nn.sigmoid(beta * xf)).astype(x.dtype)


if __name__ == "__main__":
    beta = 1.0  # module default: trainable_beta=False, initial_beta=1.0
    k0, k1 = jax.random.split(jax.random.PRNGKey(0))

    # NCHW conv-feature-shaped input (non-lane-aligned trailing dim path).
    x = jax.random.normal(k0, (2, 4, 16, 16), dtype=jnp.float32)
    y = jax.block_until_ready(swish(x, beta=beta))
    y_ref = swish_ref(x, beta=beta)
    assert y.shape == x.shape and y.dtype == x.dtype
    assert float(jnp.max(jnp.abs(y - y_ref))) < 5e-6

    # Lane-aligned trailing dim: exercises the leading-dim-collapse path and a
    # multi-step parallel grid.
    x2 = jax.random.normal(k1, (2, 8, 128), dtype=jnp.float32)
    y2 = jax.block_until_ready(swish(x2, beta=beta))
    y2_ref = swish_ref(x2, beta=beta)
    assert y2.shape == x2.shape and y2.dtype == x2.dtype
    assert float(jnp.max(jnp.abs(y2 - y2_ref))) < 5e-6

    print("KERNEL_OK")
</pallas_src>

<mosaic_0001>
module attributes {stable_mosaic.version = 11 : i64} {
  func.func @_swish_kernel(%arg0: i32, %arg1: memref<1x2048xf32, #tpu.memory_space<vmem>>, %arg2: memref<1x2048xf32, #tpu.memory_space<vmem>>) attributes {dimension_semantics = [#tpu.dimension_semantics<parallel>], iteration_bounds = array<i64: 1>, scalar_prefetch = 0 : i64, scratch_operands = 0 : i64, tpu.core_type = #tpu.core_type<tc>, window_params = [{transform_indices = @transform_0, window_bounds = array<i64: 1, 2048>}, {transform_indices = @transform_1, window_bounds = array<i64: 1, 2048>}]} {
    %c0 = arith.constant 0 : index
    %c0_0 = arith.constant 0 : index
    %0 = vector.load %arg1[%c0, %c0_0] : memref<1x2048xf32, #tpu.memory_space<vmem>>, vector<1x2048xf32>
    %cst = arith.constant 5.000000e-01 : f32
    %1 = vector.broadcast %cst : f32 to vector<1x2048xf32>
    %2 = arith.mulf %1, %0 : vector<1x2048xf32>
    %3 = math.tanh %2 : vector<1x2048xf32>
    %cst_1 = arith.constant 1.000000e+00 : f32
    %4 = vector.broadcast %cst_1 : f32 to vector<1x2048xf32>
    %5 = arith.addf %3, %4 : vector<1x2048xf32>
    %cst_2 = arith.constant 5.000000e-01 : f32
    %6 = vector.broadcast %cst_2 : f32 to vector<1x2048xf32>
    %7 = arith.mulf %6, %5 : vector<1x2048xf32>
    %8 = arith.mulf %0, %7 : vector<1x2048xf32>
    %c0_3 = arith.constant 0 : index
    %c0_4 = arith.constant 0 : index
    %9 = vector.load %arg2[%c0_3, %c0_4] : memref<1x2048xf32, #tpu.memory_space<vmem>>, vector<1x2048xf32>
    tpu.vector_store %arg2[%c0_3, %c0_4], %8 {strides = array<i32>} : memref<1x2048xf32, #tpu.memory_space<vmem>>, vector<1x2048xf32>,
    return
  }
  func.func @transform_0(%arg0: i32) -> (i32, i32) {
    %c0_i32 = arith.constant 0 : i32
    %c0_i32_0 = arith.constant 0 : i32
    return %arg0, %c0_i32 : i32, i32
  }
  func.func @transform_1(%arg0: i32) -> (i32, i32) {
    %c0_i32 = arith.constant 0 : i32
    %c0_i32_0 = arith.constant 0 : i32
    return %arg0, %c0_i32 : i32, i32
  }
}

</mosaic_0001>

<bundles_post_ra>
// kernel: tpu_custom_call.1
= control target key start
LH: loop header
LB: loop body
LE: loop exit
PB: predicated region body
PF: predicated region fallthrough
CT: control target
= control target key end

     0   :  { %6 = vsyncpa [#allocation3], 0  ;;  %s140_s0 = inlined_call_operand.hbm [shape: f32[1,2048], index: 0, kind: input, shape index: {}]   ;;  %s141_s1 = inlined_call_operand.hbm [shape: f32[1,2048], index: 1, kind: output, shape index: {}]  }
   0x1   :  { %7 = vsyncpa [#allocation4], 0  ;;  %s104_s6 = smov [#allocation2]   ;;  %s56_s10 = scalar_lea.hbm %s140_s0, 256 }
   0x2   :  { %s14_s7 = sshll.u32 %s104_s6, 4  ;;  %p57_p0 = scmp.ne.s32.totalorder %s140_s0, %s56_s10  ;;  %s15_s7 = int_to_ptr.vmem [resolvable:$true] %s14_s7 }
   0x3   :  { %p60_p1 = scmp.lt.u32.totalorder %s56_s10, %s140_s0 }
   0x5   :  { %p62_p2 = pnand %p60_p1, %p57_p0 }
   0x7   :  { %65 = shalt.err (!%p62_p2)
}
   0x8   :  { %s66_s15 = scalar_lea.vmem %s15_s7, 256  ;;  %p71_p4 = scmp.lt.s32.totalorder %s15_s7, %s15_s7 }
   0x9   :  { %p67_p3 = scmp.ne.s32.totalorder %s15_s7, %s66_s15  ;;  %p72_p5 = scmp.lt.s32.totalorder %s66_s15, %s66_s15 }
   0xb   :  { %p73_p6 = por %p72_p5, %p71_p4 }
   0xd   :  { %p74_p7 = pnand %p73_p6, %p67_p3 }
   0xf   :  { %77 = shalt.err (!%p74_p7)
}
  0x10   :  { %17 = dma.hbm_to_vmem [thread:$0]  %s140_s0, 256, %s15_s7, [#allocation3]  }
  0x11   :  { %100 = dma.done.wait [#allocation3], 256  }
  0x12   :  { %101 = vsyncadd [#allocation3], 4294967040  ;;  %v21_v0 = vld [vmem:[#allocation2] sm:$0xff]  ;;  %v22_v1 = vld [vmem:[#allocation2 + $0x8] sm:$0xff]  ;;  %s105_s18 = smov [#allocation5]  }
  0x13   :  { %v23_v2 = vmul.f32 0.5, %v21_v0  ;;  %v24_v3 = vmul.f32 0.5, %v22_v1  ;;  %s41_s19 = sshll.u32 %s105_s18, 4  ;;  %s42_s19 = int_to_ptr.vmem [resolvable:$true] %s41_s19 }
  0x14   :  { %s78_s0 = scalar_lea.vmem %s42_s19, 256  ;;  %p83_p9 = scmp.lt.s32.totalorder %s42_s19, %s42_s19 }
  0x15   :  { %52 = vtanh.f32 %v23_v2  ;;  %p79_p8 = scmp.ne.s32.totalorder %s42_s19, %s78_s0  ;;  %p84_p10 = scmp.lt.s32.totalorder %s78_s0, %s78_s0 }
  0x16   :  { %54 = vtanh.f32 %v24_v3 }
  0x17   :  { %p85_p11 = por %p84_p10, %p83_p9 }
  0x19   :  { %p86_p12 = pnand %p85_p11, %p79_p8 }
  0x1f   :  { %v53_v4 = vpop.eup %52 }
  0x20   :  { %v55_v5 = vpop.eup %54  ;;  %v27_v6 = vadd.f32 1.0, %v53_v4 }
  0x21   :  { %v28_v7 = vadd.f32 1.0, %v55_v5 }
  0x22   :  { %v29_v8 = vmul.f32 0.5, %v27_v6 }
  0x23   :  { %v30_v9 = vmul.f32 0.5, %v28_v7 }
  0x24   :  { %v31_v10 = vmul.f32 %v29_v8, %v21_v0 }
  0x25   :  { %v32_v11 = vmul.f32 %v30_v9, %v22_v1 }
  0x26   :  { %33 = vst [vmem:[#allocation5] sm:$0xff] %v31_v10 }
  0x27   :  { %34 = vst [vmem:[#allocation5 + $0x8] sm:$0xff] %v32_v11 }
  0x28   :  { %89 = shalt.err (!%p86_p12)
}
  0x29   :  { %s90_s22 = scalar_lea.hbm %s141_s1, 256 }
  0x2a   :  { %p91_p13 = scmp.ne.s32.totalorder %s141_s1, %s90_s22  ;;  %p94_p0 = scmp.lt.u32.totalorder %s90_s22, %s141_s1 }
  0x2c   :  { %p96_p1 = pnand %p94_p0, %p91_p13 }
  0x2e   :  { %99 = shalt.err (!%p96_p1)
}
  0x2f   :  { %44 = dma.vmem_to_hbm [thread:$0]  %s42_s19, 256, %s141_s1, [#allocation4]  }
  0x30   :  { %102 = dma.done.wait [#allocation4], 256  }
  0x31   :  { %103 = vsyncadd [#allocation4], 4294967040 }
  0x32   :  { %48 = vsyncpa [#allocation3], 1 }
  0x33   :  { %49 = vsyncpa [#allocation4], 1 }

</bundles_post_ra>
